<compile_context>
chip_gen: v6e
topology: v6e:2x2x1
jax: 0.10.0
libtpu: 0.0.40
codegen_flags: <defaults>
</compile_context>

<pallas_src>
import jax
import jax.numpy as jnp
from jax.experimental import pallas as pl
from jax.experimental.pallas import tpu as pltpu


# --------------------------------------------------------------------------
# Kernel
# --------------------------------------------------------------------------
def _film_kernel(x_ref, cond_ref, wc_ref, bc_ref, wgb_ref, bgb_ref, out_ref):
    # conditioning_net: Linear + ReLU (MXU matmul, f32 accumulation).
    h = jnp.dot(cond_ref[...], wc_ref[...],
                preferred_element_type=jnp.float32) + bc_ref[...]
    h = jnp.maximum(h, 0.0)

    # Fused gamma|beta head: one MXU pass with N = 2*Dp.
    gb = jnp.dot(h, wgb_ref[...],
                 preferred_element_type=jnp.float32) + bgb_ref[...]

    dp = out_ref.shape[-1]          # static, multiple of 128 -> lane-aligned slice
    gamma = gb[:, :dp]
    beta = gb[:, dp:]

    # FiLM modulation (VPU elementwise in f32, cast only at the store).
    out_ref[...] = (x_ref[...].astype(jnp.float32) * gamma + beta
                    ).astype(out_ref.dtype)


# --------------------------------------------------------------------------
# Helpers
# --------------------------------------------------------------------------
def _round_up(v, m):
    return (v + m - 1) // m * m


def _round_down(v, m):
    return (v // m) * m


def _pad2d(a, rows, cols):
    return jnp.pad(a, ((0, rows - a.shape[0]), (0, cols - a.shape[1])))


def _vmem_capacity_bytes():
    try:
        return int(pltpu.get_tpu_info().vmem_capacity_bytes)
    except Exception:
        return 64 << 20          # conservative default (v7x per-TC capacity)


def pack_film_params(w_cond, b_cond, w_gamma, b_gamma, w_beta, b_beta):
    """Pad weights to lane-dense 128-multiples and fuse the gamma/beta heads.

    Call ONCE (e.g. at model init); every forward call reuses the packed
    arrays, avoiding per-call pad/concatenate HBM round trips."""
    def as2d(b):
        b = jnp.asarray(b)
        return b[None, :] if b.ndim == 1 else b

    b_cond, b_gamma, b_beta = as2d(b_cond), as2d(b_gamma), as2d(b_beta)
    C, D = w_cond.shape
    assert w_gamma.shape == (D, D) and w_beta.shape == (D, D)
    Cp, Dp = _round_up(C, 128), _round_up(D, 128)

    wcp = _pad2d(w_cond, Cp, Dp)                                        # (Cp, Dp)
    bcp = _pad2d(b_cond, 1, Dp)                                         # (1, Dp)
    wgb = jnp.concatenate(
        [_pad2d(w_gamma, Dp, Dp), _pad2d(w_beta, Dp, Dp)], axis=1)      # (Dp, 2Dp)
    bgb = jnp.concatenate(
        [_pad2d(b_gamma, 1, Dp), _pad2d(b_beta, 1, Dp)], axis=1)        # (1, 2Dp)
    return wcp, bcp, wgb, bgb


# --------------------------------------------------------------------------
# Forward wrapper
# --------------------------------------------------------------------------
@jax.jit
def film_forward(x, cond, wcp, bcp, wgb, bgb):
    B, D = x.shape
    _, C = cond.shape
    Cp, Dp = wcp.shape                      # padded (128-multiple) feature dims
    assert wgb.shape == (Dp, 2 * Dp)

    elt = jnp.dtype(x.dtype).itemsize

    # ---- generation-aware VMEM budget & batch-tile sizing -----------------
    vmem_cap = _vmem_capacity_bytes()
    budget = int(vmem_cap * 0.8)

    # Resident weights (default pipelining allocates 2 buffers even for
    # constant-index operands) + per-row double-buffered activations and
    # f32 intermediates (h, gb).
    w_bytes = 2 * sum(int(a.size) * jnp.dtype(a.dtype).itemsize
                      for a in (wcp, bcp, wgb, bgb))
    per_row = 2 * (2 * Dp + Cp) * elt + 3 * Dp * 4

    tb = max(budget - w_bytes, 8 * per_row) // per_row
    tb = min(int(tb), 1024)
    if B > 8:                     # keep >=2 grid steps so both v7x TCs get work
        tb = min(tb, _round_up(pl.cdiv(B, 2), 8))
    tb = min(tb, _round_up(B, 8))
    TB = max(_round_down(tb, 8), 8)
    grid = (pl.cdiv(B, TB),)      # ragged last tile: output writeback is masked

    vmem_need = w_bytes + TB * per_row
    vmem_limit = max(int(vmem_need * 1.3) + (2 << 20), 16 << 20)
    vmem_limit = min(vmem_limit, int(vmem_cap * 0.92))

    # ---- feature-dim padding only when required ---------------------------
    xp = x if D == Dp else _pad2d(x, B, Dp)
    cp = cond if C == Cp else _pad2d(cond, B, Cp)
    # TODO(synk): for unaligned D/C, benchmark full-extent (unpadded) last block
    # dims with masked stores against this padded copy.

    cost = pl.CostEstimate(
        flops=2 * B * (C * D + 2 * D * D),
        transcendentals=0,
        bytes_accessed=(2 * B * D + B * C) * elt
        + sum(int(a.size) * jnp.dtype(a.dtype).itemsize
              for a in (wcp, bcp, wgb, bgb)),
    )

    batch_tile = lambda shape: pl.BlockSpec(shape, lambda i: (i, 0))
    resident = lambda shape: pl.BlockSpec(shape, lambda i: (0, 0))
    # TODO(synk): single-buffer the resident weight specs (pipeline_mode=pl.Buffered(1))
    # once support is confirmed; halves the resident-weight VMEM footprint on v7x.

    out_padded = pl.pallas_call(
        _film_kernel,
        out_shape=jax.ShapeDtypeStruct((B, Dp), x.dtype),
        grid=grid,
        in_specs=[
            batch_tile((TB, Dp)),        # x tile
            batch_tile((TB, Cp)),        # cond tile
            resident((Cp, Dp)),          # W_cond   (VMEM-resident)
            resident((1, Dp)),           # b_cond
            resident((Dp, 2 * Dp)),      # W_gamma|W_beta packed
            resident((1, 2 * Dp)),       # b_gamma|b_beta packed
        ],
        out_specs=batch_tile((TB, Dp)),
        compiler_params=pltpu.CompilerParams(
            dimension_semantics=("parallel",),
            vmem_limit_bytes=vmem_limit,
        ),
        cost_estimate=cost,
    )(xp, cp, wcp, bcp, wgb, bgb)

    return out_padded if D == Dp else out_padded[:, :D]


# --------------------------------------------------------------------------
# Params / reference
# --------------------------------------------------------------------------
def init_film_params(key, input_size, conditioning_size, dtype=jnp.float32):
    """PyTorch-nn.Linear-style init (uniform +/- 1/sqrt(fan_in)).
    Weights stored as (in_features, out_features), biases as (1, out)."""
    ks = jax.random.split(key, 6)

    def linear(kw, kb, fan_in, fan_out):
        bound = 1.0 / jnp.sqrt(fan_in)
        w = jax.random.uniform(kw, (fan_in, fan_out), dtype, -bound, bound)
        b = jax.random.uniform(kb, (1, fan_out), dtype, -bound, bound)
        return w, b

    w_cond, b_cond = linear(ks[0], ks[1], conditioning_size, input_size)
    w_gamma, b_gamma = linear(ks[2], ks[3], input_size, input_size)
    w_beta, b_beta = linear(ks[4], ks[5], input_size, input_size)
    return w_cond, b_cond, w_gamma, b_gamma, w_beta, b_beta


def film_reference(x, cond, w_cond, b_cond, w_gamma, b_gamma, w_beta, b_beta):
    h = jax.nn.relu(cond @ w_cond + b_cond)
    gamma = h @ w_gamma + b_gamma
    beta = h @ w_beta + b_beta
    return x * gamma + beta


# --------------------------------------------------------------------------
# Demo / correctness check
# --------------------------------------------------------------------------
if __name__ == "__main__":
    B, D, C = 10, 32, 16   # batch (non-multiple of 8: exercises ragged tile), input, cond

    key = jax.random.PRNGKey(0)
    k_x, k_c, k_p = jax.random.split(key, 3)

    x = jax.random.normal(k_x, (B, D), dtype=jnp.float32)
    cond = jax.random.normal(k_c, (B, C), dtype=jnp.float32)
    params = init_film_params(k_p, D, C)

    packed = pack_film_params(*params)      # done once, outside the forward path
    out = film_forward(x, cond, *packed)
    out = jax.block_until_ready(out)

    ref = film_reference(x, cond, *params)
    assert out.shape == (B, D)
    assert jnp.allclose(out, ref, atol=1e-5, rtol=1e-5), "mismatch vs reference"

    print("KERNEL_OK")
</pallas_src>

<mosaic_0001>
module attributes {stable_mosaic.version = 11 : i64} {
  func.func @_film_kernel(%arg0: i32, %arg1: memref<8x128xf32, #tpu.memory_space<vmem>>, %arg2: memref<8x128xf32, #tpu.memory_space<vmem>>, %arg3: memref<128x128xf32, #tpu.memory_space<vmem>>, %arg4: memref<1x128xf32, #tpu.memory_space<vmem>>, %arg5: memref<128x256xf32, #tpu.memory_space<vmem>>, %arg6: memref<1x256xf32, #tpu.memory_space<vmem>>, %arg7: memref<8x128xf32, #tpu.memory_space<vmem>>) attributes {dimension_semantics = [#tpu.dimension_semantics<parallel>], iteration_bounds = array<i64: 2>, scalar_prefetch = 0 : i64, scratch_operands = 0 : i64, tpu.core_type = #tpu.core_type<tc>, window_params = [{transform_indices = @transform_0, window_bounds = array<i64: 8, 128>}, {transform_indices = @transform_1, window_bounds = array<i64: 8, 128>}, {pipeline_mode = #tpu.pipeline_mode<synchronous>, transform_indices = @transform_2, window_bounds = array<i64: 128, 128>}, {pipeline_mode = #tpu.pipeline_mode<synchronous>, transform_indices = @transform_3, window_bounds = array<i64: 1, 128>}, {pipeline_mode = #tpu.pipeline_mode<synchronous>, transform_indices = @transform_4, window_bounds = array<i64: 128, 256>}, {pipeline_mode = #tpu.pipeline_mode<synchronous>, transform_indices = @transform_5, window_bounds = array<i64: 1, 256>}, {transform_indices = @transform_6, window_bounds = array<i64: 8, 128>}]} {
    %c0 = arith.constant 0 : index
    %c0_0 = arith.constant 0 : index
    %0 = vector.load %arg2[%c0, %c0_0] : memref<8x128xf32, #tpu.memory_space<vmem>>, vector<8x128xf32>
    %c0_1 = arith.constant 0 : index
    %c0_2 = arith.constant 0 : index
    %1 = vector.load %arg3[%c0_1, %c0_2] : memref<128x128xf32, #tpu.memory_space<vmem>>, vector<128x128xf32>
    %cst = arith.constant dense<0.000000e+00> : vector<8x128xf32>
    %2 = tpu.matmul %0, %1, %cst {dimension_numbers = #tpu.dot_dimension_numbers<[1], [0], [0], [1], [0, 0, 1, 1], [], []>} : vector<8x128xf32>, vector<128x128xf32>, vector<8x128xf32> -> vector<8x128xf32>
    %c0_3 = arith.constant 0 : index
    %c0_4 = arith.constant 0 : index
    %3 = vector.load %arg4[%c0_3, %c0_4] : memref<1x128xf32, #tpu.memory_space<vmem>>, vector<1x128xf32>
    %4 = vector.broadcast %3 : vector<1x128xf32> to vector<8x128xf32>
    %5 = arith.addf %2, %4 : vector<8x128xf32>
    %cst_5 = arith.constant 0.000000e+00 : f32
    %6 = vector.broadcast %cst_5 : f32 to vector<8x128xf32>
    %7 = arith.maximumf %5, %6 : vector<8x128xf32>
    %c0_6 = arith.constant 0 : index
    %c0_7 = arith.constant 0 : index
    %8 = vector.load %arg5[%c0_6, %c0_7] : memref<128x256xf32, #tpu.memory_space<vmem>>, vector<128x256xf32>
    %cst_8 = arith.constant dense<0.000000e+00> : vector<8x256xf32>
    %9 = tpu.matmul %7, %8, %cst_8 {dimension_numbers = #tpu.dot_dimension_numbers<[1], [0], [0], [1], [0, 0, 1, 1], [], []>} : vector<8x128xf32>, vector<128x256xf32>, vector<8x256xf32> -> vector<8x256xf32>
    %c0_9 = arith.constant 0 : index
    %c0_10 = arith.constant 0 : index
    %10 = vector.load %arg6[%c0_9, %c0_10] : memref<1x256xf32, #tpu.memory_space<vmem>>, vector<1x256xf32>
    %11 = vector.broadcast %10 : vector<1x256xf32> to vector<8x256xf32>
    %12 = arith.addf %9, %11 : vector<8x256xf32>
    %13 = vector.extract_strided_slice %12 {offsets = [0, 0], sizes = [8, 128], strides = [1, 1]} : vector<8x256xf32> to vector<8x128xf32>
    %14 = vector.extract_strided_slice %12 {offsets = [0, 128], sizes = [8, 128], strides = [1, 1]} : vector<8x256xf32> to vector<8x128xf32>
    %c0_11 = arith.constant 0 : index
    %c0_12 = arith.constant 0 : index
    %15 = vector.load %arg1[%c0_11, %c0_12] : memref<8x128xf32, #tpu.memory_space<vmem>>, vector<8x128xf32>
    %16 = arith.mulf %15, %13 : vector<8x128xf32>
    %17 = arith.addf %16, %14 : vector<8x128xf32>
    %c0_13 = arith.constant 0 : index
    %c0_14 = arith.constant 0 : index
    %18 = vector.load %arg7[%c0_13, %c0_14] : memref<8x128xf32, #tpu.memory_space<vmem>>, vector<8x128xf32>
    tpu.vector_store %arg7[%c0_13, %c0_14], %17 {strides = array<i32>} : memref<8x128xf32, #tpu.memory_space<vmem>>, vector<8x128xf32>,
    return
  }
  func.func @transform_0(%arg0: i32) -> (i32, i32) {
    %c0_i32 = arith.constant 0 : i32
    %c0_i32_0 = arith.constant 0 : i32
    return %arg0, %c0_i32 : i32, i32
  }
  func.func @transform_1(%arg0: i32) -> (i32, i32) {
    %c0_i32 = arith.constant 0 : i32
    %c0_i32_0 = arith.constant 0 : i32
    return %arg0, %c0_i32 : i32, i32
  }
  func.func @transform_2(%arg0: i32) -> (i32, i32) {
    %c0_i32 = arith.constant 0 : i32
    %c0_i32_0 = arith.constant 0 : i32
    %c0_i32_1 = arith.constant 0 : i32
    return %c0_i32, %c0_i32_0 : i32, i32
  }
  func.func @transform_3(%arg0: i32) -> (i32, i32) {
    %c0_i32 = arith.constant 0 : i32
    %c0_i32_0 = arith.constant 0 : i32
    %c0_i32_1 = arith.constant 0 : i32
    return %c0_i32, %c0_i32_0 : i32, i32
  }
  func.func @transform_4(%arg0: i32) -> (i32, i32) {
    %c0_i32 = arith.constant 0 : i32
    %c0_i32_0 = arith.constant 0 : i32
    %c0_i32_1 = arith.constant 0 : i32
    return %c0_i32, %c0_i32_0 : i32, i32
  }
  func.func @transform_5(%arg0: i32) -> (i32, i32) {
    %c0_i32 = arith.constant 0 : i32
    %c0_i32_0 = arith.constant 0 : i32
    %c0_i32_1 = arith.constant 0 : i32
    return %c0_i32, %c0_i32_0 : i32, i32
  }
  func.func @transform_6(%arg0: i32) -> (i32, i32) {
    %c0_i32 = arith.constant 0 : i32
    %c0_i32_0 = arith.constant 0 : i32
    return %arg0, %c0_i32 : i32, i32
  }
}

</mosaic_0001>

<bundles_post_ra>
// kernel: film_forward.1
= control target key start
LH: loop header
LB: loop body
LE: loop exit
PB: predicated region body
PF: predicated region fallthrough
CT: control target
= control target key end

     0   :  { %11 = vsyncpa [#allocation3], 0  ;;  %s1079_s0 = inlined_call_operand.vmem [shape: f32[10,128], index: 0, kind: input, shape index: {}]   ;;  %s1080_s1 = inlined_call_operand.vmem [shape: f32[10,128], index: 1, kind: input, shape index: {}]   ;;  %s1081_s2 = inlined_call_operand.hbm [shape: f32[128,128], index: 2, kind: input, shape index: {}]   ;;  %s1082_s3 = inlined_call_operand.vmem [shape: f32[1,128], index: 3, kind: input, shape index: {}]   ;;  %s1083_s4 = inlined_call_operand.hbm [shape: f32[128,256], index: 4, kind: input, shape index: {}]   ;;  %s1084_s5 = inlined_call_operand.vmem [shape: f32[1,256], index: 5, kind: input, shape index: {}]   ;;  %s1085_s6 = inlined_call_operand.hbm [shape: f32[10,128], index: 6, kind: output, shape index: {}]  }
   0x1   :  { %12 = vsyncpa [#allocation6], 0 }
   0x2   :  { %13 = vsyncpa [#allocation4], 0 }
   0x3   :  { %15 = vsyncpa [#allocation4 + $0x1], 0  ;;  %s915_s21 = smov 0   ;;  %s917_s22 = smov 0  }
   0x4   :  { %s919_s23 = smov 0   ;;  %s921_s24 = smov 0  }
   0x5 LB: > { %s936_s25 = sadd.s32 4294967295, %s869_s24   ;;  %s615_s26 = sadd.s32 4294967294, %s869_s24   ;;  %s869_s24 = sphi %s921_s24, %s1099_s24   ;;  %s865_s23 = sphi %s919_s23, %s1098_s23   ;;  %s861_s22 = sphi %s917_s22, %s1097_s22   ;;  %s857_s21 = sphi %s915_s21, %s1096_s21  }
   0x6   : > { %s940_s27 = sadd.s32 1, %s869_s24   ;;  %s164_s28 = sadd.s32 1, %s865_s23 }
   0x7   : > { %s161_s29 = ssub.s32 %s869_s24, %s940_s27  ;;  %p174_p0 = scmp.ne.s32.totalorder %s865_s23, %s861_s22 }
   0x8   : > { %p162_p1 = scmp.eq.s32.totalorder %s161_s29, 0  ;;  %p175_p2 = scmp.eq.s32.totalorder %s936_s25, 1 }
   0x9   : > { %p180_p3 = scmp.ne.s32.totalorder %s861_s22, %s857_s21  ;;  %p181_p4 = scmp.eq.s32.totalorder %s615_s26, 1 }
   0xa   : > { %s951_s30 = scalar_select %p162_p1, %s865_s23, %s164_s28  }
   0xb   : > { %p953_p5 = por %p175_p2, %p174_p0  ;;  %p957_p6 = por %p181_p4, %p180_p3 }
   0xc   : > { %p616_p7 = scmp.ge.s32.totalorder %s869_s24, 1  ;;  %p188_p8 = scmp.lt.s32.totalorder %s869_s24, 3 }
   0xd   : > { %s1088_s8 = scalar_select %p957_p6, 1, 0 }
   0xe   : > { %p1086_p9 = scmp.eq.s32.totalorder %s936_s25, 0  ;;  %p964_p10 = pnand %p616_p7, %p188_p8 }
   0xf   : > { %s871_s10 = smov [#allocation2]   ;;  %s872_s13 = smov [#allocation5]  }
  0x10   : > { %s200_s11 = sshll.u32 %s871_s10, 4  ;;  %p693_p11 = pneg %p964_p10  ;;  %s201_s11 = int_to_ptr.vmem [resolvable:$true] %s200_s11 }
  0x11   : > { %s216_s14 = sshll.u32 %s872_s13, 4  ;;  %s760_s15 = scalar_lea.vmem %s201_s11, 2048  ;;  %s217_s14 = int_to_ptr.vmem [resolvable:$true] %s216_s14 }
  0x12   : > { %p972_p12 = pnand %p1086_p9, %p693_p11  ;;  %p761_p0 = scmp.ne.s32.totalorder %s201_s11, %s760_s15 }
  0x13   : > { %p768_p3 = scmp.lt.s32.totalorder %s201_s11, %s201_s11  ;;  %p769_p4 = scmp.lt.s32.totalorder %s760_s15, %s760_s15 }
  0x14   : > { %p751_p13 = pneg %p972_p12 }
  0x15   : > { %p770_p7 = por %p769_p4, %p768_p3 }
  0x16   : > { %p763_p1 = pnand %p761_p0, %p751_p13 }
  0x18   : > { %p764_p2 = pneg %p763_p1 }
  0x1a   : > { %p771_p8 = pnand %p770_p7, %p764_p2 }
  0x1c   : > { %774 = shalt.err (!%p771_p8)
}
  0x1d   : > { %s873_s16 = smov 128   ;;  %s874_s17 = smov 8  }
  0x1e   : > { %696 = dma.hbm_to_vmem [thread:$0]  (!%p972_p12), %s1081_s2, 2048, %s201_s11, [#allocation3], %s873_s16, %s873_s16, %s874_s17  }
  0x1f   : > { %s786_s20 = scalar_lea.vmem %s217_s14, 4096  ;;  %p794_p9 = scmp.lt.s32.totalorder %s217_s14, %s217_s14 }
  0x20   : > { %p787_p11 = scmp.ne.s32.totalorder %s217_s14, %s786_s20  ;;  %p795_p6 = scmp.lt.s32.totalorder %s786_s20, %s786_s20 }
  0x22   : > { %p789_p0 = pnand %p787_p11, %p751_p13  ;;  %p796_p3 = por %p795_p6, %p794_p9 }
  0x24   : > { %p790_p1 = pneg %p789_p0 }
  0x26   : > { %p797_p2 = pnand %p796_p3, %p790_p1 }
  0x28   : > { %800 = shalt.err (!%p797_p2)
}
  0x29   : > { %s875_s26 = smov 256   ;;  %s876_s28 = smov 16  }
  0x2a   : > { %699 = dma.hbm_to_vmem [thread:$0]  (!%p972_p12), %s1083_s4, 4096, %s217_s14, [#allocation6], %s875_s26, %s875_s26, %s876_s28  }
  0x2b   : > { %249 = sbr.rel (%p964_p10) target bundleno = 494 (0x1ee), region = 44  ;;  %p1091_p4 = scmp.eq.s32.totalorder (!%p964_p10), %s936_s25, 0 }
  0x30   : > { %844 = dma.done.wait (%p1091_p4), [#allocation3], 2048   ;;  %p1092_p13 = pmov %p1091_p4 }
  0x31   : > { %p1093_p6 = pmov %p1091_p4 }
  0x32   : > { %846 = vsyncadd (%p1092_p13), [#allocation3], 4294965248 }
  0x33   : > { %848 = dma.done.wait (%p1093_p6), [#allocation6], 4096   ;;  %p1094_p9 = pmov %p1091_p4 }
  0x34   : > { %v877_v0 = vmov 0.0   ;;  %vm878_vm0 = vmmov 0   ;;  %v310_v1 = vld [vmem:[#allocation2 + $0x78] sm:$0xff]  ;;  %v309_v2 = vld [vmem:[#allocation2 + $0x70] sm:$0xff]  ;;  %v308_v3 = vld [vmem:[#allocation2 + $0x68] sm:$0xff]  ;;  %p286_p10 = scmp.lt.s32.totalorder %s936_s25, 1  ;;  %v423_v55 = vlaneseq }
  0x35   : > { %850 = vsyncadd (%p1094_p9), [#allocation6], 4294963200  ;;  %648 = vmatprep.subr.mxu0 %v877_v0  ;;  %680 = vmatprep.mubr.msk.f32.mxu0 %vm878_vm0, %v877_v0  ;;  %v307_v4 = vld [vmem:[#allocation2 + $0x60] sm:$0xff]  ;;  %v306_v5 = vld [vmem:[#allocation2 + $0x58] sm:$0xff]  ;;  %s283_s17 = sand.u32 1, %s861_s22   ;;  %s628_s10 = sshll.u32 %s936_s25, 7 }
  0x36   : > { %497 = vmatprep.mubr.f32.mxu1 %v877_v0  ;;  %649 = vmatpush3.msra.mxu0 %v310_v1  ;;  %v420_v6 = vld [vmem:[#allocation5 + $0xf8] sm:$0xff]  ;;  %v419_v7 = vld [vmem:[#allocation5 + $0xf0] sm:$0xff]  ;;  %v418_v8 = vld [vmem:[#allocation5 + $0xe8] sm:$0xff]  ;;  %s1020_s9 = scalar_select %p286_p10, %s936_s25, 1  ;;  %v424_v56 = vshrl.u32 %v423_v55, 7 }
  0x37   : > { %650 = vmatprep.subr.mxu0 %v877_v0  ;;  %433 = vmatprep.subr.mxu1 %v420_v6  ;;  %v417_v9 = vld [vmem:[#allocation5 + $0xe0] sm:$0xff]  ;;  %v416_v10 = vld [vmem:[#allocation5 + $0xd8] sm:$0xff]  ;;  %v305_v11 = vld [vmem:[#allocation2 + $0x50] sm:$0xff]  ;;  %s623_s20 = sshll.u32 %s283_s17, 3  ;;  %s879_s18 = smov [#allocation7]  }
  0x38   : > { %651 = vmatpush3.msra.mxu0 %v309_v2  ;;  %434 = vmatpush1.msra.mxu1 %v419_v7  ;;  %v415_v12 = vld [vmem:[#allocation5 + $0xd0] sm:$0xff]  ;;  %v414_v13 = vld [vmem:[#allocation5 + $0xc8] sm:$0xff]  ;;  %v413_v15 = vld [vmem:[#allocation5 + $0xc0] sm:$0xff]  ;;  %s624_s11 = sshll.u32 %s1020_s9, 3  ;;  %v425_v57 = vsub.s32 0, %v424_v56  ;;  %v429_v59 = vsub.s32 1, %v424_v56  ;;  %s520_s9 = scalar_lea.hbm %s1085_s6, %s628_s10 }
  0x39   : > { %652 = vmatprep.subr.mxu0 %v877_v0  ;;  %435 = vmatprep.subr.mxu1 %v418_v8  ;;  %v304_v14 = vld [vmem:[#allocation2 + $0x48] sm:$0xff]  ;;  %v412_v16 = vld [vmem:[#allocation5 + $0xb8] sm:$0xff]  ;;  %v303_v17 = vld [vmem:[#allocation2 + $0x40] sm:$0xff]  ;;  %s293_s14 = scalar_lea.vmem %s1080_s1, %s624_s11  ;;  %s289_s29 = scalar_lea.vmem %s1079_s0, %s624_s11 }
  0x3a   : > { %653 = vmatpush3.msra.mxu0 %v308_v3  ;;  %436 = vmatpush1.msra.mxu1 %v417_v9  ;;  %v411_v18 = vld [vmem:[#allocation5 + $0xb0] sm:$0xff]  ;;  %v410_v19 = vld [vmem:[#allocation5 + $0xa8] sm:$0xff]  ;;  %v302_v20 = vld [vmem:[#allocation2 + $0x38] sm:$0xff]  ;;  %s285_s12 = scalar_lea.vmem [#allocation7], %s623_s20  ;;  %s509_s11 = scalar_lea.sflag [#allocation4], %s283_s17 }
  0x3b   : > { %654 = vmatprep.subr.mxu0 %v877_v0  ;;  %437 = vmatprep.subr.mxu1 %v416_v10  ;;  %v409_v21 = vld [vmem:[#allocation5 + $0xa0] sm:$0xff]  ;;  %v408_v22 = vld [vmem:[#allocation5 + $0x98] sm:$0xff]  ;;  %v301_v23 = vld [vmem:[#allocation2 + $0x30] sm:$0xff]  ;;  %s522_s13 = sshll.u32 %s285_s12, 4  ;;  %s805_s19 = sshll.u32 %s879_s18, 4  ;;  %s523_s13 = int_to_ptr.vmem [resolvable:$true] %s522_s13  ;;  %s806_s19 = int_to_ptr.vmem [resolvable:$false] %s805_s19 }
  0x3c   : > { %655 = vmatpush3.msra.mxu0 %v307_v4  ;;  %438 = vmatpush1.msra.mxu1 %v415_v12  ;;  %v407_v24 = vld [vmem:[#allocation5 + $0x90] sm:$0xff]  ;;  %v406_v25 = vld [vmem:[#allocation5 + $0x88] sm:$0xff]  ;;  %v405_v27 = vld [vmem:[#allocation5 + $0x80] sm:$0xff]  ;;  %s801_s16 = scalar_lea.vmem %s523_s13, 128  ;;  %s807_s25 = scalar_lea.vmem %s806_s19, 256 }
  0x3d   : > { %656 = vmatprep.subr.mxu0 %v877_v0  ;;  %439 = vmatprep.subr.mxu1 %v414_v13  ;;  %v300_v26 = vld [vmem:[#allocation2 + $0x28] sm:$0xff]  ;;  %v404_v28 = vld [vmem:[#allocation5 + $0x78] sm:$0xff]  ;;  %v299_v29 = vld [vmem:[#allocation2 + $0x20] sm:$0xff]  ;;  %p802_p12 = scmp.ne.s32.totalorder %s523_s13, %s801_s16  ;;  %p808_p11 = scmp.lt.s32.totalorder %s523_s13, %s806_s19 }
  0x3e   : > { %657 = vmatpush3.msra.mxu0 %v306_v5  ;;  %440 = vmatpush1.msra.mxu1 %v413_v15  ;;  %v403_v30 = vld [vmem:[#allocation5 + $0x70] sm:$0xff]  ;;  %v402_v31 = vld [vmem:[#allocation5 + $0x68] sm:$0xff]  ;;  %v298_v32 = vld [vmem:[#allocation2 + $0x18] sm:$0xff]  ;;  %p809_p0 = scmp.lt.s32.totalorder %s807_s25, %s801_s16 }
  0x3f   : > { %658 = vmatprep.subr.mxu0 %v877_v0  ;;  %441 = vmatprep.subr.mxu1 %v412_v16  ;;  %v401_v33 = vld [vmem:[#allocation5 + $0x60] sm:$0xff]  ;;  %v400_v34 = vld [vmem:[#allocation5 + $0x58] sm:$0xff]  ;;  %v297_v35 = vld [vmem:[#allocation2 + $0x10] sm:$0xff]  ;;  %p803_p7 = pnand %p802_p12, %p953_p5 }
  0x40   : > { %659 = vmatpush3.msra.mxu0 %v305_v11  ;;  %442 = vmatpush1.msra.mxu1 %v411_v18  ;;  %v399_v36 = vld [vmem:[#allocation5 + $0x50] sm:$0xff]  ;;  %v398_v37 = vld [vmem:[#allocation5 + $0x48] sm:$0xff]  ;;  %v397_v39 = vld [vmem:[#allocation5 + $0x40] sm:$0xff]  ;;  %p810_p1 = por %p809_p0, %p808_p11 }
  0x41   : > { %660 = vmatprep.subr.mxu0 %v877_v0  ;;  %443 = vmatprep.subr.mxu1 %v410_v19  ;;  %v296_v38 = vld [vmem:[#allocation2 + $0x8] sm:$0xff]  ;;  %v396_v40 = vld [vmem:[#allocation5 + $0x38] sm:$0xff]  ;;  %v295_v41 = vld [vmem:[#allocation2] sm:$0xff]  ;;  %p804_p8 = pneg %p803_p7 }
  0x42   : > { %661 = vmatpush3.msra.mxu0 %v304_v14  ;;  %444 = vmatpush1.msra.mxu1 %v409_v21  ;;  %v395_v42 = vld [vmem:[#allocation5 + $0x30] sm:$0xff]  ;;  %v294_v43 = vld [vmem:[%s293_s14] sm:$0xff]  ;;  %v394_v44 = vld [vmem:[#allocation5 + $0x28] sm:$0xff] }
  0x43   : > { %662 = vmatprep.subr.mxu0 %v877_v0  ;;  %445 = vmatprep.subr.mxu1 %v408_v22  ;;  %v393_v45 = vld [vmem:[#allocation5 + $0x20] sm:$0xff]  ;;  %v392_v46 = vld [vmem:[#allocation5 + $0x18] sm:$0xff]  ;;  %v391_v47 = vld [vmem:[#allocation5 + $0x10] sm:$0xff]  ;;  %p811_p3 = pnand %p810_p1, %p804_p8 }
  0x44   : > { %663 = vmatpush3.msra.mxu0 %v303_v17  ;;  %446 = vmatpush1.msra.mxu1 %v407_v24  ;;  %v390_v48 = vld [vmem:[#allocation5 + $0x8] sm:$0xff]  ;;  %v389_v49 = vld [vmem:[#allocation5] sm:$0xff] }
  0x45   : > { %664 = vmatprep.subr.mxu0 %v877_v0  ;;  %447 = vmatprep.subr.mxu1 %v406_v25  ;;  %v626_v50 = vld [vmem:[%s1082_s3] ss:$0 sm:$0xff] }
  0x46   : > { %665 = vmatpush3.msra.mxu0 %v302_v20  ;;  %448 = vmatpush1.msra.mxu1 %v405_v27  ;;  %v421_v58 = vld [vmem:[%s1084_s5] sm:$0x3] }
  0x47   : > { %666 = vmatprep.subr.mxu0 %v877_v0  ;;  %449 = vmatprep.subr.mxu1 %v404_v28  ;;  %v426_v60 = vrot.slane %v421_v58, %v425_v57  ;;  %v430_v61 = vrot.slane %v421_v58, %v429_v59  ;;  %v504_v63 = vld [vmem:[%s289_s29] sm:$0xff] }
  0x48   : > { %667 = vmatpush3.msra.mxu0 %v301_v23  ;;  %450 = vmatpush1.msra.mxu1 %v403_v30 }
  0x49   : > { %668 = vmatprep.subr.mxu0 %v877_v0  ;;  %451 = vmatprep.subr.mxu1 %v402_v31 }
  0x4a   : > { %669 = vmatpush3.msra.mxu0 %v300_v26  ;;  %452 = vmatpush1.msra.mxu1 %v401_v33 }
  0x4b   : > { %670 = vmatprep.subr.mxu0 %v877_v0  ;;  %453 = vmatprep.subr.mxu1 %v400_v34 }
  0x4c   : > { %671 = vmatpush3.msra.mxu0 %v299_v29  ;;  %454 = vmatpush1.msra.mxu1 %v399_v36 }
  0x4d   : > { %672 = vmatprep.subr.mxu0 %v877_v0  ;;  %455 = vmatprep.subr.mxu1 %v398_v37 }
  0x4e   : > { %673 = vmatpush3.msra.mxu0 %v298_v32  ;;  %456 = vmatpush1.msra.mxu1 %v397_v39 }
  0x4f   : > { %674 = vmatprep.subr.mxu0 %v877_v0  ;;  %457 = vmatprep.subr.mxu1 %v396_v40 }
  0x50   : > { %675 = vmatpush3.msra.mxu0 %v297_v35  ;;  %458 = vmatpush1.msra.mxu1 %v395_v42 }
  0x51   : > { %676 = vmatprep.subr.mxu0 %v877_v0  ;;  %459 = vmatprep.subr.mxu1 %v394_v44 }
  0x52   : > { %677 = vmatpush3.msra.mxu0 %v296_v38  ;;  %460 = vmatpush1.msra.mxu1 %v393_v45 }
  0x53   : > { %678 = vmatprep.subr.mxu0 %v877_v0  ;;  %461 = vmatprep.subr.mxu1 %v392_v46 }
  0x54   : > { %679 = vmatpush3.msra.mxu0 %v295_v41  ;;  %462 = vmatpush1.msra.mxu1 %v391_v47 }
  0x55   : > { %681 = vmatmul.mubr.f32.vlgmr.msra.gmra.mxu0 %v294_v43  ;;  %463 = vmatprep.subr.mxu1 %v390_v48 }
  0x56   : > { %464 = vmatpush1.msra.mxu1 %v389_v49 }
 0x115   : > { %v384_v51 = vpop.f32.mrf.mxu0 }
 0x116   : > { %v385_v52 = vadd.f32 %v626_v50, %v384_v51 }
 0x117   : > { %v682_v53 = vpop.f32.mrf.mxu0 }
 0x118   : > { %v388_v54 = vmax.f32 %v385_v52, 0.0 }
 0x11a   : > { %498 = vmatmul.mubr.f32.vlgmr.msra.gmra.mxu1 %v388_v54 }
 0x1da   : > { %v499_v62 = vpop.f32.mrf.mxu1 }
 0x1db   : > { %v500_v0 = vadd.f32 %v499_v62, %v426_v60 }
 0x1dc   : > { %v501_v1 = vpop.f32.mrf.mxu1 }
 0x1dd   : > { %v505_v2 = vmul.f32 %v504_v63, %v500_v0  ;;  %v502_v3 = vadd.f32 %v501_v1, %v430_v61 }
 0x1df   : > { %v506_v4 = vadd.f32 %v505_v2, %v502_v3 }
 0x1e1   : > { %507 = vst [vmem:[%s285_s12] sm:$0xff] %v506_v4 }
 0x1e2   : > { %814 = shalt.err (!%p811_p3)
}
 0x1e3   : > { %s815_s20 = scalar_lea.hbm %s520_s9, 128  ;;  %s819_s28 = scalar_lea.hbm %s1085_s6, 256 }
 0x1e4   : > { %p816_p2 = scmp.ne.s32.totalorder %s520_s9, %s815_s20  ;;  %p820_p6 = scmp.lt.s32.totalorder %s520_s9, %s1085_s6 }
 0x1e5   : > { %p821_p9 = scmp.lt.s32.totalorder %s819_s28, %s815_s20 }
 0x1e6   : > { %p817_p4 = pnand %p816_p2, %p953_p5 }
 0x1e7   : > { %p822_p10 = por %p821_p9, %p820_p6 }
 0x1e8   : > { %p818_p13 = pneg %p817_p4 }
 0x1ea   : > { %p823_p12 = pnand %p822_p10, %p818_p13 }
 0x1ec   : > { %826 = shalt.err (!%p823_p12)
}
 0x1ed   : > { %691 = dma.vmem_to_hbm [thread:$0]  (%p953_p5), %s523_s13, 128, %s520_s9, %s509_s11  }
 0x1ee PF: > { %p708_p7 = scmp.ge.s32.totalorder %s869_s24, 2  ;;  %s534_s12 = sand.u32 1, %s857_s21  }
 0x1ef   : > { %p1095_p8 = scmp.ne.s32.totalorder %s1088_s8, 0  ;;  %s535_s14 = scalar_lea.sflag [#allocation4], %s534_s12 }
 0x1f1   : > { %p701_p11 = pnand %p708_p7, %p1095_p8 }
 0x1f3   : > { %p702_p0 = pneg %p701_p11 }
 0x1f5   : > { %852 = dma.done.wait (%p702_p0), %s535_s14, 128  }
 0x1f6   : > { %854 = vsyncadd (%p702_p0), %s535_s14, 4294967168  ;;  %p18_p1 = scmp.ge.s32.totalorder %s940_s27, 4   ;;  %s1096_s21 = smov %s861_s22 }
 0x1f7   : > { %s1097_s22 = smov %s865_s23  ;;  %s1098_s23 = smov %s951_s30 }
 0x1f8   : > { %s1099_s24 = smov %s940_s27  ;;  %20 = sbr.rel (!%p18_p1) target bundleno = 5 (0x5), region = 91 }
 0x1fd   :  { %540 = vsyncpa [#allocation3], 1 }
 0x1fe   :  { %542 = vsyncpa [#allocation3 + $0x1], 1 }
 0x1ff   :  { %543 = vsyncpa [#allocation6], 1 }
 0x200   :  { %544 = vsyncpa [#allocation4], 1 }
 0x201   :  { %546 = vsyncpa [#allocation4 + $0x1], 1 }

</bundles_post_ra>
